<compile_context>
chip_gen: v7x
topology: tpu7x:2x2x1
jax: 0.10.0
libtpu: 0.0.40
codegen_flags: <defaults>
</compile_context>

<pallas_src>
import jax
import jax.numpy as jnp
from jax.experimental import pallas as pl
from jax.experimental.pallas import tpu as pltpu


def _round_up(x, m):
    return ((x + m - 1) // m) * m


def _sigmoid(x):
    # Single EUP op (tanh) instead of exp + reciprocal.
    return 0.5 * jnp.tanh(0.5 * x) + 0.5


def _rowsum(x):
    """(TB, TR, 128) -> (1, 128): reduce batch + sublane axes, keep lanes."""
    return jnp.sum(jnp.sum(x, axis=0), axis=0, keepdims=True)


def _yolo_loss_kernel(anc_ref, pred_ref, tgt_ref, out_ref):
    # anc_ref : (A, 4) f32 SMEM table [w, h, 1/w, 1/h]
    # pred_ref: (TB, D, TR, 128) f32 VMEM  (channel-major dense cell planes)
    # tgt_ref : (TB, 6, TR, 128) f32 VMEM  [obj, x, y, w, h, class]
    # out_ref : (8, 128) f32 VMEM; rows 0..5 hold per-block lane partials of
    #           [noobj_sum, noobj_cnt, obj_sum, obj_cnt, coord_sum, class_sum]
    a = pl.program_id(0)                       # anchor index of this grid step
    anc_w = anc_ref[a, 0]
    anc_h = anc_ref[a, 1]
    inv_w = anc_ref[a, 2]
    inv_h = anc_ref[a, 3]

    t0 = tgt_ref[:, 0]                         # (TB, TR, 128)
    obj_m = t0 == 1.0                          # exact equality, as in the reference
    noobj_m = t0 == 0.0                        # padded cells carry obj = -1 -> excluded

    # ---- no-object loss: BCEWithLogits(p0, 0) over noobj cells ---------------
    p0 = pred_ref[:, 0]
    e = jnp.exp(-jnp.abs(p0))
    bce0 = jnp.maximum(p0, 0.0) + jnp.log(1.0 + e)   # target is exactly 0 on noobj cells
    sig_p0 = _sigmoid(p0)

    # ---- decoded box predictions ----------------------------------------------
    px = _sigmoid(pred_ref[:, 1])
    py = _sigmoid(pred_ref[:, 2])
    pw_raw = pred_ref[:, 3]
    ph_raw = pred_ref[:, 4]
    pw = jnp.exp(pw_raw) * anc_w
    ph = jnp.exp(ph_raw) * anc_h
    tx = tgt_ref[:, 1]
    ty = tgt_ref[:, 2]
    tw = tgt_ref[:, 3]
    th = tgt_ref[:, 4]

    # ---- IoU (is_pred=True branch of the reference) ----------------------------
    b1x1 = px - pw * 0.5
    b1x2 = px + pw * 0.5
    b1y1 = py - ph * 0.5
    b1y2 = py + ph * 0.5
    b2x1 = tx - tw * 0.5
    b2x2 = tx + tw * 0.5
    b2y1 = ty - th * 0.5
    b2y2 = ty + th * 0.5
    iw = jnp.maximum(jnp.minimum(b1x2, b2x2) - jnp.maximum(b1x1, b2x1), 0.0)
    ih = jnp.maximum(jnp.minimum(b1y2, b2y2) - jnp.maximum(b1y1, b2y1), 0.0)
    inter = iw * ih
    area1 = jnp.abs((b1x2 - b1x1) * (b1y2 - b1y1))
    area2 = jnp.abs((b2x2 - b2x1) * (b2y2 - b2y1))
    # approx reciprocal: ~1e-4 relative error vs exact division (documented)
    ious = inter * pl.reciprocal(area1 + area2 - inter + 1e-6, approx=True)

    # ---- object loss: MSE(sigmoid(p0), iou * t0) over obj cells ----------------
    od = sig_p0 - ious * t0

    # ---- coord loss -------------------------------------------------------------
    tw_log = jnp.log(1e-16 + tw * inv_w)
    th_log = jnp.log(1e-16 + th * inv_h)
    d1 = px - tx
    d2 = py - ty
    d3 = pw_raw - tw_log
    d4 = ph_raw - th_log
    coord_sq = d1 * d1 + d2 * d2 + d3 * d3 + d4 * d4

    # ---- class loss: softmax cross-entropy over obj cells ----------------------
    logits = pred_ref[:, 5:]                              # (TB, C, TR, 128)
    m = jnp.max(logits, axis=1)                           # (TB, TR, 128)
    sexp = jnp.sum(jnp.exp(logits - m[:, None]), axis=1)
    lse = m + jnp.log(sexp)
    label = tgt_ref[:, 5].astype(jnp.int32)               # (TB, TR, 128); -1 on padding
    cls_idx = jax.lax.broadcasted_iota(jnp.int32, logits.shape, 1)
    picked = jnp.sum(jnp.where(cls_idx == label[:, None], logits, 0.0), axis=1)
    ce = lse - picked

    # ---- emit sublane-reduced lane partials (rows 0..5 of the (8,128) block) ----
    f32 = jnp.float32
    out_ref[0:1, :] = _rowsum(jnp.where(noobj_m, bce0, 0.0))
    out_ref[1:2, :] = _rowsum(noobj_m.astype(f32))
    out_ref[2:3, :] = _rowsum(jnp.where(obj_m, od * od, 0.0))
    out_ref[3:4, :] = _rowsum(obj_m.astype(f32))
    out_ref[4:5, :] = _rowsum(jnp.where(obj_m, coord_sq, 0.0))
    out_ref[5:6, :] = _rowsum(jnp.where(obj_m, ce, 0.0))
    out_ref[6:8, :] = jnp.zeros((2, 128), f32)


@jax.jit
def yolo_loss(pred, target, anchors):
    """pred: (B, A, S, S, 5+C), target: (B, A, S, S, 6), anchors: (A, 2)."""
    B, A, S, S2, D = pred.shape
    assert S == S2 and target.shape[-1] == 6
    f32 = jnp.float32
    NC = S * S

    # --- cell-axis tiling: lane-dense (NR, 128) planes ----------------------------
    P = _round_up(NC, 128)
    NR = P // 128
    if NR > 64:
        # Pad further so NR is a multiple of 64 -> big blocks, short grid.  Padded
        # cells are excluded via the objectness = -1 padding below.
        NR = _round_up(NR, 64)
        P = NR * 128
        TR = 64
    else:
        TR = NR
    G1 = NR // TR

    # Batch folding: TB*TR <= 256 rows keeps double-buffered pred+target blocks
    # under ~24 MiB even for COCO (D=85) -> safe on v7x's 64 MiB VMEM.
    ROW_BUDGET = 256
    tb_cap = max(1, ROW_BUDGET // TR)
    TB = max(t for t in range(1, B + 1) if B % t == 0 and t <= tb_cap)
    BB = B // TB

    # --- channel-major layout: (A, B, feature, cells); one transpose + one pad ----
    # TODO(synk): have the detection head emit channel-major activations directly so
    # this transpose (fused into the pallas_call inputs via allow_input_fusion when
    # XLA can) disappears entirely.
    pred_cm = jnp.transpose(pred.reshape(B, A, NC, D).astype(f32), (1, 0, 3, 2))
    tgt_cm = jnp.transpose(target.reshape(B, A, NC, 6).astype(f32), (1, 0, 3, 2))
    if P > NC:
        cfg = [(0, 0, 0), (0, 0, 0), (0, 0, 0), (0, P - NC, 0)]
        pred_cm = jax.lax.pad(pred_cm, jnp.float32(0.0), cfg)
        # objectness = -1 on padded cells -> excluded from both masks in the kernel
        tgt_cm = jax.lax.pad(tgt_cm, jnp.float32(-1.0), cfg)
    pred5 = pred_cm.reshape(A, B, D, NR, 128)
    tgt5 = tgt_cm.reshape(A, B, 6, NR, 128)

    # --- tiny anchor table in SMEM: [w, h, 1/w, 1/h] -------------------------------
    anc = anchors.astype(f32).reshape(A, 2)
    anc_tab = jnp.concatenate([anc, 1.0 / anc], axis=-1)   # (A, 4)

    partials = pl.pallas_call(
        _yolo_loss_kernel,
        out_shape=jax.ShapeDtypeStruct((A, BB, G1, 8, 128), f32),
        grid=(A, BB, G1),
        in_specs=[
            pl.BlockSpec(memory_space=pltpu.MemorySpace.SMEM),          # anchors
            pl.BlockSpec((None, TB, D, TR, 128),
                         lambda a, b, j: (a, b, 0, j, 0)),              # pred
            pl.BlockSpec((None, TB, 6, TR, 128),
                         lambda a, b, j: (a, b, 0, j, 0)),              # target
        ],
        out_specs=pl.BlockSpec((None, None, None, 8, 128),
                               lambda a, b, j: (a, b, j, 0, 0)),
        compiler_params=pltpu.CompilerParams(
            dimension_semantics=("parallel", "parallel", "parallel"),
            vmem_limit_bytes=32 * 1024 * 1024,
            allow_input_fusion=[False, True, True],
        ),
    )(anc_tab, pred5, tgt5)

    # --- final lane reduction + weighted combination (cheap scalar math) -----------
    sums = jnp.sum(partials, axis=(0, 1, 2, 4))             # (8,)
    noobj_sum, noobj_cnt = sums[0], sums[1]
    obj_sum, obj_cnt = sums[2], sums[3]
    coord_sum, class_sum = sums[4], sums[5]

    # NOTE: PyTorch returns NaN when a mask is empty (mean over 0 elements); here an
    # empty mask contributes 0 instead (guarded denominators).
    noobj_den = jnp.maximum(noobj_cnt, 1.0)
    obj_den = jnp.maximum(obj_cnt, 1.0)
    L_noobj = noobj_sum / noobj_den
    L_obj = obj_sum / obj_den
    L_coord = coord_sum / (4.0 * obj_den)                    # MSE mean over 4*n_obj
    L_class = class_sum / obj_den

    lambda_class, lambda_no_obj, lambda_obj, lambda_coord = 1.0, 10.0, 1.0, 10.0
    return (lambda_coord * L_coord + lambda_obj * L_obj
            + lambda_no_obj * L_noobj + lambda_class * L_class)


if __name__ == "__main__":
    key = jax.random.PRNGKey(0)
    B, A, S, C = 2, 3, 16, 3
    D = 5 + C
    k1, k2, k3, k4, k5 = jax.random.split(key, 5)

    pred = jax.random.normal(k1, (B, A, S, S, D), dtype=jnp.float32)

    # target layout: [objness(0/1), x, y, w, h, class]
    objness = (jax.random.uniform(k2, (B, A, S, S)) < 0.3).astype(jnp.float32)
    txy = jax.random.uniform(k3, (B, A, S, S, 2), dtype=jnp.float32)
    twh = jax.random.uniform(k4, (B, A, S, S, 2), dtype=jnp.float32,
                             minval=0.1, maxval=2.0)
    tcls = jax.random.randint(k5, (B, A, S, S), 0, C).astype(jnp.float32)
    target = jnp.concatenate(
        [objness[..., None], txy, twh, tcls[..., None]], axis=-1)

    anchors = jnp.array([[0.9, 1.2], [0.5, 0.7], [1.5, 0.8]], dtype=jnp.float32)

    loss = jax.block_until_ready(yolo_loss(pred, target, anchors))
    assert jnp.isfinite(loss), "loss is not finite"
    print("KERNEL_OK")
</pallas_src>

<mosaic_0001>
module attributes {stable_mosaic.version = 11 : i64} {
  func.func @_yolo_loss_kernel(%arg0: i32, %arg1: i32, %arg2: i32, %arg3: memref<3x4xf32, #tpu.memory_space<smem>>, %arg4: memref<1x2x8x2x128xf32, #tpu.memory_space<vmem>>, %arg5: memref<1x2x6x2x128xf32, #tpu.memory_space<vmem>>, %arg6: memref<1x1x1x8x128xf32, #tpu.memory_space<vmem>>) attributes {dimension_semantics = [#tpu.dimension_semantics<parallel>, #tpu.dimension_semantics<parallel>, #tpu.dimension_semantics<parallel>], iteration_bounds = array<i64: 3, 1, 1>, scalar_prefetch = 0 : i64, scratch_operands = 0 : i64, tpu.core_type = #tpu.core_type<tc>, window_params = [{transform_indices = @transform_0, window_bounds = array<i64: 3, 4>}, {transform_indices = @transform_1, window_bounds = array<i64: 1, 2, 8, 2, 128>}, {transform_indices = @transform_2, window_bounds = array<i64: 1, 2, 6, 2, 128>}, {transform_indices = @transform_3, window_bounds = array<i64: 1, 1, 1, 8, 128>}]} {
    %0 = arith.index_cast %arg0 : i32 to index
    %c0 = arith.constant 0 : index
    %1 = memref.load %arg3[%0, %c0] : memref<3x4xf32, #tpu.memory_space<smem>>
    %2 = arith.index_cast %arg0 : i32 to index
    %c1 = arith.constant 1 : index
    %3 = memref.load %arg3[%2, %c1] : memref<3x4xf32, #tpu.memory_space<smem>>
    %4 = arith.index_cast %arg0 : i32 to index
    %c2 = arith.constant 2 : index
    %5 = memref.load %arg3[%4, %c2] : memref<3x4xf32, #tpu.memory_space<smem>>
    %6 = arith.index_cast %arg0 : i32 to index
    %c3 = arith.constant 3 : index
    %7 = memref.load %arg3[%6, %c3] : memref<3x4xf32, #tpu.memory_space<smem>>
    %c0_0 = arith.constant 0 : index
    %c0_1 = arith.constant 0 : index
    %c0_2 = arith.constant 0 : index
    %c0_3 = arith.constant 0 : index
    %c0_4 = arith.constant 0 : index
    %8 = vector.load %arg5[%c0_0, %c0_1, %c0_2, %c0_3, %c0_4] : memref<1x2x6x2x128xf32, #tpu.memory_space<vmem>>, vector<1x2x1x2x128xf32>
    %9 = vector.shape_cast %8 : vector<1x2x1x2x128xf32> to vector<2x2x128xf32>
    %cst = arith.constant 1.000000e+00 : f32
    %10 = vector.broadcast %cst : f32 to vector<2x2x128xf32>
    %11 = arith.cmpf oeq, %9, %10 : vector<2x2x128xf32>
    %cst_5 = arith.constant 0.000000e+00 : f32
    %12 = vector.broadcast %cst_5 : f32 to vector<2x2x128xf32>
    %13 = arith.cmpf oeq, %9, %12 : vector<2x2x128xf32>
    %c0_6 = arith.constant 0 : index
    %c0_7 = arith.constant 0 : index
    %c0_8 = arith.constant 0 : index
    %c0_9 = arith.constant 0 : index
    %c0_10 = arith.constant 0 : index
    %14 = vector.load %arg4[%c0_6, %c0_7, %c0_8, %c0_9, %c0_10] : memref<1x2x8x2x128xf32, #tpu.memory_space<vmem>>, vector<1x2x1x2x128xf32>
    %15 = vector.shape_cast %14 : vector<1x2x1x2x128xf32> to vector<2x2x128xf32>
    %16 = math.absf %15 : vector<2x2x128xf32>
    %cst_11 = arith.constant 0.000000e+00 : f32
    %17 = vector.broadcast %cst_11 : f32 to vector<2x2x128xf32>
    %18 = arith.subf %17, %16 : vector<2x2x128xf32>
    %19 = math.exp %18 : vector<2x2x128xf32>
    %cst_12 = arith.constant 0.000000e+00 : f32
    %20 = vector.broadcast %cst_12 : f32 to vector<2x2x128xf32>
    %21 = arith.maximumf %15, %20 : vector<2x2x128xf32>
    %cst_13 = arith.constant 1.000000e+00 : f32
    %22 = vector.broadcast %cst_13 : f32 to vector<2x2x128xf32>
    %23 = arith.addf %22, %19 : vector<2x2x128xf32>
    %24 = math.log %23 : vector<2x2x128xf32>
    %25 = arith.addf %21, %24 : vector<2x2x128xf32>
    %cst_14 = arith.constant 5.000000e-01 : f32
    %26 = vector.broadcast %cst_14 : f32 to vector<2x2x128xf32>
    %27 = arith.mulf %26, %15 : vector<2x2x128xf32>
    %28 = math.tanh %27 : vector<2x2x128xf32>
    %cst_15 = arith.constant 5.000000e-01 : f32
    %29 = vector.broadcast %cst_15 : f32 to vector<2x2x128xf32>
    %30 = arith.mulf %29, %28 : vector<2x2x128xf32>
    %cst_16 = arith.constant 5.000000e-01 : f32
    %31 = vector.broadcast %cst_16 : f32 to vector<2x2x128xf32>
    %32 = arith.addf %30, %31 : vector<2x2x128xf32>
    %c0_17 = arith.constant 0 : index
    %c0_18 = arith.constant 0 : index
    %c1_19 = arith.constant 1 : index
    %c0_20 = arith.constant 0 : index
    %c0_21 = arith.constant 0 : index
    %33 = vector.load %arg4[%c0_17, %c0_18, %c1_19, %c0_20, %c0_21] : memref<1x2x8x2x128xf32, #tpu.memory_space<vmem>>, vector<1x2x1x2x128xf32>
    %34 = vector.shape_cast %33 : vector<1x2x1x2x128xf32> to vector<2x2x128xf32>
    %cst_22 = arith.constant 5.000000e-01 : f32
    %35 = vector.broadcast %cst_22 : f32 to vector<2x2x128xf32>
    %36 = arith.mulf %35, %34 : vector<2x2x128xf32>
    %37 = math.tanh %36 : vector<2x2x128xf32>
    %cst_23 = arith.constant 5.000000e-01 : f32
    %38 = vector.broadcast %cst_23 : f32 to vector<2x2x128xf32>
    %39 = arith.mulf %38, %37 : vector<2x2x128xf32>
    %cst_24 = arith.constant 5.000000e-01 : f32
    %40 = vector.broadcast %cst_24 : f32 to vector<2x2x128xf32>
    %41 = arith.addf %39, %40 : vector<2x2x128xf32>
    %c0_25 = arith.constant 0 : index
    %c0_26 = arith.constant 0 : index
    %c2_27 = arith.constant 2 : index
    %c0_28 = arith.constant 0 : index
    %c0_29 = arith.constant 0 : index
    %42 = vector.load %arg4[%c0_25, %c0_26, %c2_27, %c0_28, %c0_29] : memref<1x2x8x2x128xf32, #tpu.memory_space<vmem>>, vector<1x2x1x2x128xf32>
    %43 = vector.shape_cast %42 : vector<1x2x1x2x128xf32> to vector<2x2x128xf32>
    %cst_30 = arith.constant 5.000000e-01 : f32
    %44 = vector.broadcast %cst_30 : f32 to vector<2x2x128xf32>
    %45 = arith.mulf %44, %43 : vector<2x2x128xf32>
    %46 = math.tanh %45 : vector<2x2x128xf32>
    %cst_31 = arith.constant 5.000000e-01 : f32
    %47 = vector.broadcast %cst_31 : f32 to vector<2x2x128xf32>
    %48 = arith.mulf %47, %46 : vector<2x2x128xf32>
    %cst_32 = arith.constant 5.000000e-01 : f32
    %49 = vector.broadcast %cst_32 : f32 to vector<2x2x128xf32>
    %50 = arith.addf %48, %49 : vector<2x2x128xf32>
    %c0_33 = arith.constant 0 : index
    %c0_34 = arith.constant 0 : index
    %c3_35 = arith.constant 3 : index
    %c0_36 = arith.constant 0 : index
    %c0_37 = arith.constant 0 : index
    %51 = vector.load %arg4[%c0_33, %c0_34, %c3_35, %c0_36, %c0_37] : memref<1x2x8x2x128xf32, #tpu.memory_space<vmem>>, vector<1x2x1x2x128xf32>
    %52 = vector.shape_cast %51 : vector<1x2x1x2x128xf32> to vector<2x2x128xf32>
    %c0_38 = arith.constant 0 : index
    %c0_39 = arith.constant 0 : index
    %c4 = arith.constant 4 : index
    %c0_40 = arith.constant 0 : index
    %c0_41 = arith.constant 0 : index
    %53 = vector.load %arg4[%c0_38, %c0_39, %c4, %c0_40, %c0_41] : memref<1x2x8x2x128xf32, #tpu.memory_space<vmem>>, vector<1x2x1x2x128xf32>
    %54 = vector.shape_cast %53 : vector<1x2x1x2x128xf32> to vector<2x2x128xf32>
    %55 = math.exp %52 : vector<2x2x128xf32>
    %56 = vector.broadcast %1 : f32 to vector<2x2x128xf32>
    %57 = arith.mulf %55, %56 : vector<2x2x128xf32>
    %58 = math.exp %54 : vector<2x2x128xf32>
    %59 = vector.broadcast %3 : f32 to vector<2x2x128xf32>
    %60 = arith.mulf %58, %59 : vector<2x2x128xf32>
    %c0_42 = arith.constant 0 : index
    %c0_43 = arith.constant 0 : index
    %c1_44 = arith.constant 1 : index
    %c0_45 = arith.constant 0 : index
    %c0_46 = arith.constant 0 : index
    %61 = vector.load %arg5[%c0_42, %c0_43, %c1_44, %c0_45, %c0_46] : memref<1x2x6x2x128xf32, #tpu.memory_space<vmem>>, vector<1x2x1x2x128xf32>
    %62 = vector.shape_cast %61 : vector<1x2x1x2x128xf32> to vector<2x2x128xf32>
    %c0_47 = arith.constant 0 : index
    %c0_48 = arith.constant 0 : index
    %c2_49 = arith.constant 2 : index
    %c0_50 = arith.constant 0 : index
    %c0_51 = arith.constant 0 : index
    %63 = vector.load %arg5[%c0_47, %c0_48, %c2_49, %c0_50, %c0_51] : memref<1x2x6x2x128xf32, #tpu.memory_space<vmem>>, vector<1x2x1x2x128xf32>
    %64 = vector.shape_cast %63 : vector<1x2x1x2x128xf32> to vector<2x2x128xf32>
    %c0_52 = arith.constant 0 : index
    %c0_53 = arith.constant 0 : index
    %c3_54 = arith.constant 3 : index
    %c0_55 = arith.constant 0 : index
    %c0_56 = arith.constant 0 : index
    %65 = vector.load %arg5[%c0_52, %c0_53, %c3_54, %c0_55, %c0_56] : memref<1x2x6x2x128xf32, #tpu.memory_space<vmem>>, vector<1x2x1x2x128xf32>
    %66 = vector.shape_cast %65 : vector<1x2x1x2x128xf32> to vector<2x2x128xf32>
    %c0_57 = arith.constant 0 : index
    %c0_58 = arith.constant 0 : index
    %c4_59 = arith.constant 4 : index
    %c0_60 = arith.constant 0 : index
    %c0_61 = arith.constant 0 : index
    %67 = vector.load %arg5[%c0_57, %c0_58, %c4_59, %c0_60, %c0_61] : memref<1x2x6x2x128xf32, #tpu.memory_space<vmem>>, vector<1x2x1x2x128xf32>
    %68 = vector.shape_cast %67 : vector<1x2x1x2x128xf32> to vector<2x2x128xf32>
    %cst_62 = arith.constant 5.000000e-01 : f32
    %69 = vector.broadcast %cst_62 : f32 to vector<2x2x128xf32>
    %70 = arith.mulf %57, %69 : vector<2x2x128xf32>
    %71 = arith.subf %41, %70 : vector<2x2x128xf32>
    %cst_63 = arith.constant 5.000000e-01 : f32
    %72 = vector.broadcast %cst_63 : f32 to vector<2x2x128xf32>
    %73 = arith.mulf %57, %72 : vector<2x2x128xf32>
    %74 = arith.addf %41, %73 : vector<2x2x128xf32>
    %cst_64 = arith.constant 5.000000e-01 : f32
    %75 = vector.broadcast %cst_64 : f32 to vector<2x2x128xf32>
    %76 = arith.mulf %60, %75 : vector<2x2x128xf32>
    %77 = arith.subf %50, %76 : vector<2x2x128xf32>
    %cst_65 = arith.constant 5.000000e-01 : f32
    %78 = vector.broadcast %cst_65 : f32 to vector<2x2x128xf32>
    %79 = arith.mulf %60, %78 : vector<2x2x128xf32>
    %80 = arith.addf %50, %79 : vector<2x2x128xf32>
    %cst_66 = arith.constant 5.000000e-01 : f32
    %81 = vector.broadcast %cst_66 : f32 to vector<2x2x128xf32>
    %82 = arith.mulf %66, %81 : vector<2x2x128xf32>
    %83 = arith.subf %62, %82 : vector<2x2x128xf32>
    %cst_67 = arith.constant 5.000000e-01 : f32
    %84 = vector.broadcast %cst_67 : f32 to vector<2x2x128xf32>
    %85 = arith.mulf %66, %84 : vector<2x2x128xf32>
    %86 = arith.addf %62, %85 : vector<2x2x128xf32>
    %cst_68 = arith.constant 5.000000e-01 : f32
    %87 = vector.broadcast %cst_68 : f32 to vector<2x2x128xf32>
    %88 = arith.mulf %68, %87 : vector<2x2x128xf32>
    %89 = arith.subf %64, %88 : vector<2x2x128xf32>
    %cst_69 = arith.constant 5.000000e-01 : f32
    %90 = vector.broadcast %cst_69 : f32 to vector<2x2x128xf32>
    %91 = arith.mulf %68, %90 : vector<2x2x128xf32>
    %92 = arith.addf %64, %91 : vector<2x2x128xf32>
    %93 = arith.minimumf %74, %86 : vector<2x2x128xf32>
    %94 = arith.maximumf %71, %83 : vector<2x2x128xf32>
    %95 = arith.subf %93, %94 : vector<2x2x128xf32>
    %cst_70 = arith.constant 0.000000e+00 : f32
    %96 = vector.broadcast %cst_70 : f32 to vector<2x2x128xf32>
    %97 = arith.maximumf %95, %96 : vector<2x2x128xf32>
    %98 = arith.minimumf %80, %92 : vector<2x2x128xf32>
    %99 = arith.maximumf %77, %89 : vector<2x2x128xf32>
    %100 = arith.subf %98, %99 : vector<2x2x128xf32>
    %cst_71 = arith.constant 0.000000e+00 : f32
    %101 = vector.broadcast %cst_71 : f32 to vector<2x2x128xf32>
    %102 = arith.maximumf %100, %101 : vector<2x2x128xf32>
    %103 = arith.mulf %97, %102 : vector<2x2x128xf32>
    %104 = arith.subf %74, %71 : vector<2x2x128xf32>
    %105 = arith.subf %80, %77 : vector<2x2x128xf32>
    %106 = arith.mulf %104, %105 : vector<2x2x128xf32>
    %107 = math.absf %106 : vector<2x2x128xf32>
    %108 = arith.subf %86, %83 : vector<2x2x128xf32>
    %109 = arith.subf %92, %89 : vector<2x2x128xf32>
    %110 = arith.mulf %108, %109 : vector<2x2x128xf32>
    %111 = math.absf %110 : vector<2x2x128xf32>
    %112 = arith.addf %107, %111 : vector<2x2x128xf32>
    %113 = arith.subf %112, %103 : vector<2x2x128xf32>
    %cst_72 = arith.constant 9.99999997E-7 : f32
    %114 = vector.broadcast %cst_72 : f32 to vector<2x2x128xf32>
    %115 = arith.addf %113, %114 : vector<2x2x128xf32>
    %116 = tpu.reciprocal %115 {approx = true} : vector<2x2x128xf32> -> vector<2x2x128xf32>
    %117 = arith.mulf %103, %116 : vector<2x2x128xf32>
    %118 = arith.mulf %117, %9 : vector<2x2x128xf32>
    %119 = arith.subf %32, %118 : vector<2x2x128xf32>
    %120 = vector.broadcast %5 : f32 to vector<2x2x128xf32>
    %121 = arith.mulf %66, %120 : vector<2x2x128xf32>
    %cst_73 = arith.constant 1.000000e-16 : f32
    %122 = vector.broadcast %cst_73 : f32 to vector<2x2x128xf32>
    %123 = arith.addf %122, %121 : vector<2x2x128xf32>
    %124 = math.log %123 : vector<2x2x128xf32>
    %125 = vector.broadcast %7 : f32 to vector<2x2x128xf32>
    %126 = arith.mulf %68, %125 : vector<2x2x128xf32>
    %cst_74 = arith.constant 1.000000e-16 : f32
    %127 = vector.broadcast %cst_74 : f32 to vector<2x2x128xf32>
    %128 = arith.addf %127, %126 : vector<2x2x128xf32>
    %129 = math.log %128 : vector<2x2x128xf32>
    %130 = arith.subf %41, %62 : vector<2x2x128xf32>
    %131 = arith.subf %50, %64 : vector<2x2x128xf32>
    %132 = arith.subf %52, %124 : vector<2x2x128xf32>
    %133 = arith.subf %54, %129 : vector<2x2x128xf32>
    %134 = arith.mulf %130, %130 : vector<2x2x128xf32>
    %135 = arith.mulf %131, %131 : vector<2x2x128xf32>
    %136 = arith.addf %134, %135 : vector<2x2x128xf32>
    %137 = arith.mulf %132, %132 : vector<2x2x128xf32>
    %138 = arith.addf %136, %137 : vector<2x2x128xf32>
    %139 = arith.mulf %133, %133 : vector<2x2x128xf32>
    %140 = arith.addf %138, %139 : vector<2x2x128xf32>
    %c0_75 = arith.constant 0 : index
    %c0_76 = arith.constant 0 : index
    %c5 = arith.constant 5 : index
    %c0_77 = arith.constant 0 : index
    %c0_78 = arith.constant 0 : index
    %141 = vector.load %arg4[%c0_75, %c0_76, %c5, %c0_77, %c0_78] : memref<1x2x8x2x128xf32, #tpu.memory_space<vmem>>, vector<1x2x3x2x128xf32>
    %142 = vector.shape_cast %141 : vector<1x2x3x2x128xf32> to vector<2x3x2x128xf32>
    %cst_79 = arith.constant dense<0xFF800000> : vector<2x2x128xf32>
    %143 = vector.multi_reduction <maximumf>, %142, %cst_79 [1] : vector<2x3x2x128xf32> to vector<2x2x128xf32>
    %144 = vector.shape_cast %143 : vector<2x2x128xf32> to vector<2x1x2x128xf32>
    %145 = vector.broadcast %144 : vector<2x1x2x128xf32> to vector<2x3x2x128xf32>
    %146 = arith.subf %142, %145 : vector<2x3x2x128xf32>
    %147 = math.exp %146 : vector<2x3x2x128xf32>
    %cst_80 = arith.constant dense<0.000000e+00> : vector<2x2x128xf32>
    %148 = vector.multi_reduction <add>, %147, %cst_80 [1] : vector<2x3x2x128xf32> to vector<2x2x128xf32>
    %149 = math.log %148 : vector<2x2x128xf32>
    %150 = arith.addf %143, %149 : vector<2x2x128xf32>
    %c0_81 = arith.constant 0 : index
    %c0_82 = arith.constant 0 : index
    %c5_83 = arith.constant 5 : index
    %c0_84 = arith.constant 0 : index
    %c0_85 = arith.constant 0 : index
    %151 = vector.load %arg5[%c0_81, %c0_82, %c5_83, %c0_84, %c0_85] : memref<1x2x6x2x128xf32, #tpu.memory_space<vmem>>, vector<1x2x1x2x128xf32>
    %152 = vector.shape_cast %151 : vector<1x2x1x2x128xf32> to vector<2x2x128xf32>
    %153 = arith.fptosi %152 : vector<2x2x128xf32> to vector<2x2x128xi32>
    %154 = tpu.iota {dimensions = array<i32: 1>} : vector<2x3x2x128xi32>
    %155 = vector.shape_cast %153 : vector<2x2x128xi32> to vector<2x1x2x128xi32>
    %156 = vector.broadcast %155 : vector<2x1x2x128xi32> to vector<2x3x2x128xi32>
    %157 = arith.cmpi eq, %154, %156 : vector<2x3x2x128xi32>
    %cst_86 = arith.constant 0.000000e+00 : f32
    %158 = vector.broadcast %cst_86 : f32 to vector<2x3x2x128xf32>
    %159 = arith.select %157, %142, %158 : vector<2x3x2x128xi1>, vector<2x3x2x128xf32>
    %cst_87 = arith.constant dense<0.000000e+00> : vector<2x2x128xf32>
    %160 = vector.multi_reduction <add>, %159, %cst_87 [1] : vector<2x3x2x128xf32> to vector<2x2x128xf32>
    %161 = arith.subf %150, %160 : vector<2x2x128xf32>
    %cst_88 = arith.constant 0.000000e+00 : f32
    %162 = vector.broadcast %cst_88 : f32 to vector<2x2x128xf32>
    %163 = arith.select %13, %25, %162 : vector<2x2x128xi1>, vector<2x2x128xf32>
    %cst_89 = arith.constant dense<0.000000e+00> : vector<2x128xf32>
    %164 = vector.multi_reduction <add>, %163, %cst_89 [0] : vector<2x2x128xf32> to vector<2x128xf32>
    %cst_90 = arith.constant dense<0.000000e+00> : vector<128xf32>
    %165 = vector.multi_reduction <add>, %164, %cst_90 [0] : vector<2x128xf32> to vector<128xf32>
    %166 = vector.shape_cast %165 : vector<128xf32> to vector<1x128xf32>
    %c0_91 = arith.constant 0 : index
    %c0_92 = arith.constant 0 : index
    %c0_93 = arith.constant 0 : index
    %c0_94 = arith.constant 0 : index
    %c0_95 = arith.constant 0 : index
    %167 = vector.load %arg6[%c0_91, %c0_92, %c0_93, %c0_94, %c0_95] : memref<1x1x1x8x128xf32, #tpu.memory_space<vmem>>, vector<1x1x1x1x128xf32>
    %168 = vector.shape_cast %167 : vector<1x1x1x1x128xf32> to vector<1x128xf32>
    %169 = vector.shape_cast %166 : vector<1x128xf32> to vector<1x1x1x1x128xf32>
    tpu.vector_store %arg6[%c0_91, %c0_92, %c0_93, %c0_94, %c0_95], %169 {strides = array<i32>} : memref<1x1x1x8x128xf32, #tpu.memory_space<vmem>>, vector<1x1x1x1x128xf32>,
    %170 = arith.extui %13 : vector<2x2x128xi1> to vector<2x2x128xi32>
    %171 = arith.sitofp %170 : vector<2x2x128xi32> to vector<2x2x128xf32>
    %cst_96 = arith.constant dense<0.000000e+00> : vector<2x128xf32>
    %172 = vector.multi_reduction <add>, %171, %cst_96 [0] : vector<2x2x128xf32> to vector<2x128xf32>
    %cst_97 = arith.constant dense<0.000000e+00> : vector<128xf32>
    %173 = vector.multi_reduction <add>, %172, %cst_97 [0] : vector<2x128xf32> to vector<128xf32>
    %174 = vector.shape_cast %173 : vector<128xf32> to vector<1x128xf32>
    %c0_98 = arith.constant 0 : index
    %c0_99 = arith.constant 0 : index
    %c0_100 = arith.constant 0 : index
    %c1_101 = arith.constant 1 : index
    %c0_102 = arith.constant 0 : index
    %175 = vector.load %arg6[%c0_98, %c0_99, %c0_100, %c1_101, %c0_102] : memref<1x1x1x8x128xf32, #tpu.memory_space<vmem>>, vector<1x1x1x1x128xf32>
    %176 = vector.shape_cast %175 : vector<1x1x1x1x128xf32> to vector<1x128xf32>
    %177 = vector.shape_cast %174 : vector<1x128xf32> to vector<1x1x1x1x128xf32>
    tpu.vector_store %arg6[%c0_98, %c0_99, %c0_100, %c1_101, %c0_102], %177 {strides = array<i32>} : memref<1x1x1x8x128xf32, #tpu.memory_space<vmem>>, vector<1x1x1x1x128xf32>,
    %178 = arith.mulf %119, %119 : vector<2x2x128xf32>
    %cst_103 = arith.constant 0.000000e+00 : f32
    %179 = vector.broadcast %cst_103 : f32 to vector<2x2x128xf32>
    %180 = arith.select %11, %178, %179 : vector<2x2x128xi1>, vector<2x2x128xf32>
    %cst_104 = arith.constant dense<0.000000e+00> : vector<2x128xf32>
    %181 = vector.multi_reduction <add>, %180, %cst_104 [0] : vector<2x2x128xf32> to vector<2x128xf32>
    %cst_105 = arith.constant dense<0.000000e+00> : vector<128xf32>
    %182 = vector.multi_reduction <add>, %181, %cst_105 [0] : vector<2x128xf32> to vector<128xf32>
    %183 = vector.shape_cast %182 : vector<128xf32> to vector<1x128xf32>
    %c0_106 = arith.constant 0 : index
    %c0_107 = arith.constant 0 : index
    %c0_108 = arith.constant 0 : index
    %c2_109 = arith.constant 2 : index
    %c0_110 = arith.constant 0 : index
    %184 = vector.load %arg6[%c0_106, %c0_107, %c0_108, %c2_109, %c0_110] : memref<1x1x1x8x128xf32, #tpu.memory_space<vmem>>, vector<1x1x1x1x128xf32>
    %185 = vector.shape_cast %184 : vector<1x1x1x1x128xf32> to vector<1x128xf32>
    %186 = vector.shape_cast %183 : vector<1x128xf32> to vector<1x1x1x1x128xf32>
    tpu.vector_store %arg6[%c0_106, %c0_107, %c0_108, %c2_109, %c0_110], %186 {strides = array<i32>} : memref<1x1x1x8x128xf32, #tpu.memory_space<vmem>>, vector<1x1x1x1x128xf32>,
    %187 = arith.extui %11 : vector<2x2x128xi1> to vector<2x2x128xi32>
    %188 = arith.sitofp %187 : vector<2x2x128xi32> to vector<2x2x128xf32>
    %cst_111 = arith.constant dense<0.000000e+00> : vector<2x128xf32>
    %189 = vector.multi_reduction <add>, %188, %cst_111 [0] : vector<2x2x128xf32> to vector<2x128xf32>
    %cst_112 = arith.constant dense<0.000000e+00> : vector<128xf32>
    %190 = vector.multi_reduction <add>, %189, %cst_112 [0] : vector<2x128xf32> to vector<128xf32>
    %191 = vector.shape_cast %190 : vector<128xf32> to vector<1x128xf32>
    %c0_113 = arith.constant 0 : index
    %c0_114 = arith.constant 0 : index
    %c0_115 = arith.constant 0 : index
    %c3_116 = arith.constant 3 : index
    %c0_117 = arith.constant 0 : index
    %192 = vector.load %arg6[%c0_113, %c0_114, %c0_115, %c3_116, %c0_117] : memref<1x1x1x8x128xf32, #tpu.memory_space<vmem>>, vector<1x1x1x1x128xf32>
    %193 = vector.shape_cast %192 : vector<1x1x1x1x128xf32> to vector<1x128xf32>
    %194 = vector.shape_cast %191 : vector<1x128xf32> to vector<1x1x1x1x128xf32>
    tpu.vector_store %arg6[%c0_113, %c0_114, %c0_115, %c3_116, %c0_117], %194 {strides = array<i32>} : memref<1x1x1x8x128xf32, #tpu.memory_space<vmem>>, vector<1x1x1x1x128xf32>,
    %cst_118 = arith.constant 0.000000e+00 : f32
    %195 = vector.broadcast %cst_118 : f32 to vector<2x2x128xf32>
    %196 = arith.select %11, %140, %195 : vector<2x2x128xi1>, vector<2x2x128xf32>
    %cst_119 = arith.constant dense<0.000000e+00> : vector<2x128xf32>
    %197 = vector.multi_reduction <add>, %196, %cst_119 [0] : vector<2x2x128xf32> to vector<2x128xf32>
    %cst_120 = arith.constant dense<0.000000e+00> : vector<128xf32>
    %198 = vector.multi_reduction <add>, %197, %cst_120 [0] : vector<2x128xf32> to vector<128xf32>
    %199 = vector.shape_cast %198 : vector<128xf32> to vector<1x128xf32>
    %c0_121 = arith.constant 0 : index
    %c0_122 = arith.constant 0 : index
    %c0_123 = arith.constant 0 : index
    %c4_124 = arith.constant 4 : index
    %c0_125 = arith.constant 0 : index
    %200 = vector.load %arg6[%c0_121, %c0_122, %c0_123, %c4_124, %c0_125] : memref<1x1x1x8x128xf32, #tpu.memory_space<vmem>>, vector<1x1x1x1x128xf32>
    %201 = vector.shape_cast %200 : vector<1x1x1x1x128xf32> to vector<1x128xf32>
    %202 = vector.shape_cast %199 : vector<1x128xf32> to vector<1x1x1x1x128xf32>
    tpu.vector_store %arg6[%c0_121, %c0_122, %c0_123, %c4_124, %c0_125], %202 {strides = array<i32>} : memref<1x1x1x8x128xf32, #tpu.memory_space<vmem>>, vector<1x1x1x1x128xf32>,
    %cst_126 = arith.constant 0.000000e+00 : f32
    %203 = vector.broadcast %cst_126 : f32 to vector<2x2x128xf32>
    %204 = arith.select %11, %161, %203 : vector<2x2x128xi1>, vector<2x2x128xf32>
    %cst_127 = arith.constant dense<0.000000e+00> : vector<2x128xf32>
    %205 = vector.multi_reduction <add>, %204, %cst_127 [0] : vector<2x2x128xf32> to vector<2x128xf32>
    %cst_128 = arith.constant dense<0.000000e+00> : vector<128xf32>
    %206 = vector.multi_reduction <add>, %205, %cst_128 [0] : vector<2x128xf32> to vector<128xf32>
    %207 = vector.shape_cast %206 : vector<128xf32> to vector<1x128xf32>
    %c0_129 = arith.constant 0 : index
    %c0_130 = arith.constant 0 : index
    %c0_131 = arith.constant 0 : index
    %c5_132 = arith.constant 5 : index
    %c0_133 = arith.constant 0 : index
    %208 = vector.load %arg6[%c0_129, %c0_130, %c0_131, %c5_132, %c0_133] : memref<1x1x1x8x128xf32, #tpu.memory_space<vmem>>, vector<1x1x1x1x128xf32>
    %209 = vector.shape_cast %208 : vector<1x1x1x1x128xf32> to vector<1x128xf32>
    %210 = vector.shape_cast %207 : vector<1x128xf32> to vector<1x1x1x1x128xf32>
    tpu.vector_store %arg6[%c0_129, %c0_130, %c0_131, %c5_132, %c0_133], %210 {strides = array<i32>} : memref<1x1x1x8x128xf32, #tpu.memory_space<vmem>>, vector<1x1x1x1x128xf32>,
    %cst_134 = arith.constant 0.000000e+00 : f32
    %211 = vector.broadcast %cst_134 : f32 to vector<2x128xf32>
    %c0_135 = arith.constant 0 : index
    %c0_136 = arith.constant 0 : index
    %c0_137 = arith.constant 0 : index
    %c6 = arith.constant 6 : index
    %c0_138 = arith.constant 0 : index
    %212 = vector.load %arg6[%c0_135, %c0_136, %c0_137, %c6, %c0_138] : memref<1x1x1x8x128xf32, #tpu.memory_space<vmem>>, vector<1x1x1x2x128xf32>
    %213 = vector.shape_cast %212 : vector<1x1x1x2x128xf32> to vector<2x128xf32>
    %214 = vector.shape_cast %211 : vector<2x128xf32> to vector<1x1x1x2x128xf32>
    tpu.vector_store %arg6[%c0_135, %c0_136, %c0_137, %c6, %c0_138], %214 {strides = array<i32>} : memref<1x1x1x8x128xf32, #tpu.memory_space<vmem>>, vector<1x1x1x2x128xf32>,
    return
  }
  func.func @transform_0(%arg0: i32, %arg1: i32, %arg2: i32) -> (i32, i32) {
    %c0_i32 = arith.constant 0 : i32
    %c0_i32_0 = arith.constant 0 : i32
    %c0_i32_1 = arith.constant 0 : i32
    return %c0_i32, %c0_i32_0 : i32, i32
  }
  func.func @transform_1(%arg0: i32, %arg1: i32, %arg2: i32) -> (i32, i32, i32, i32, i32) {
    %c0_i32 = arith.constant 0 : i32
    %c0_i32_0 = arith.constant 0 : i32
    %c0_i32_1 = arith.constant 0 : i32
    return %arg0, %arg1, %c0_i32, %arg2, %c0_i32_0 : i32, i32, i32, i32, i32
  }
  func.func @transform_2(%arg0: i32, %arg1: i32, %arg2: i32) -> (i32, i32, i32, i32, i32) {
    %c0_i32 = arith.constant 0 : i32
    %c0_i32_0 = arith.constant 0 : i32
    %c0_i32_1 = arith.constant 0 : i32
    return %arg0, %arg1, %c0_i32, %arg2, %c0_i32_0 : i32, i32, i32, i32, i32
  }
  func.func @transform_3(%arg0: i32, %arg1: i32, %arg2: i32) -> (i32, i32, i32, i32, i32) {
    %c0_i32 = arith.constant 0 : i32
    %c0_i32_0 = arith.constant 0 : i32
    %c0_i32_1 = arith.constant 0 : i32
    return %arg0, %arg1, %arg2, %c0_i32, %c0_i32_0 : i32, i32, i32, i32, i32
  }
}

</mosaic_0001>

<bundles_post_ra>
// kernel: yolo_loss.1
= control target key start
LH: loop header
LB: loop body
LE: loop exit
PB: predicated region body
PF: predicated region fallthrough
CT: control target
= control target key end

     0   :  { %8 = vsyncpa [#allocation3], 0  ;;  %s1010_s12 = smov 0   ;;  %s1012_s13 = smov 0   ;;  %s1386_s0 = inlined_call_operand.vmem [shape: f32[3,4], index: 0, kind: input, shape index: {}]   ;;  %s1387_s1 = inlined_call_operand.vmem [shape: f32[3,2,8,2,128], index: 1, kind: input, shape index: {}]   ;;  %s1388_s2 = inlined_call_operand.vmem [shape: f32[3,2,6,2,128], index: 2, kind: input, shape index: {}]   ;;  %s1389_s3 = inlined_call_operand.vmem [shape: f32[3,1,1,8,128], index: 3, kind: output, shape index: {}]  }
   0x1   :  { %s1014_s14 = smov 0  }
   0x2 LB: > { %s805_s15 = sadd.s32 4294967295, %s986_s14   ;;  %s33_s16 = sadd.s32 1, %s982_s13  ;;  %s986_s14 = sphi %s1014_s14, %s14_s14   ;;  %s982_s13 = sphi %s1012_s13, %s1393_s13   ;;  %s978_s12 = sphi %s1010_s12, %s1392_s12  }
   0x3   : > { %p35_p0 = scmp.ge.s32.totalorder %s33_s16, 3  ;;  %p807_p1 = scmp.ge.s32.totalorder %s986_s14, 1 }
   0x4   : > { %p149_p2 = scmp.lt.s32.totalorder %s986_s14, 4  ;;  %p1035_p4 = scmp.eq.s32.totalorder %s805_s15, 0 }
   0x5   : > { %s1395_s16 = smov (%p35_p0, %s33_s16), 0  ;;  %s162_s21 = sshll.u32 %s1386_s0, 4  ;;  %s163_s21 = int_to_ptr.vmem [resolvable:$true] %s162_s21 }
   0x6   : > { %p1031_p3 = pnand %p807_p1, %p149_p2  ;;  %s945_s22 = scalar_lea.vmem %s163_s21, 64 }
   0x7   : > { %p946_p7 = scmp.ne.s32.totalorder %s163_s21, %s945_s22  ;;  %p953_p11 = scmp.lt.s32.totalorder %s163_s21, %s163_s21 }
   0x8   : > { %p857_p5 = pneg %p1031_p3  ;;  %p954_p12 = scmp.lt.s32.totalorder %s945_s22, %s945_s22 }
   0xa   : > { %p858_p6 = pnand %p1035_p4, %p857_p5  ;;  %p955_p13 = por %p954_p12, %p953_p11 }
   0xc   : > { %p947_p8 = pneg %p858_p6 }
   0xe   : > { %p948_p9 = pnand %p947_p8, %p946_p7 }
  0x10   : > { %p949_p10 = pneg %p948_p9 }
  0x12   : > { %p956_p0 = pnand %p955_p13, %p949_p10 }
  0x14   : > { %959 = shalt.err (!%p956_p0)
}
  0x15   : > { %s988_s23 = smov [#allocation2]   ;;  %209 = sbr.rel (%p1031_p3) target bundleno = 149 (0x95), region = 32 }
  0x16   : > { %860 = dma.vmem_to_smem (!%p858_p6), %s163_s21, 64, %s988_s23, [#allocation3]  }
  0x1c   : > { %973 = dma.done.wait (%p1035_p4), [#allocation3], 64  }
  0x1d   : > { %975 = vsyncadd (%p1035_p4), [#allocation3], 4294967232 }
  0x1e   : > { %215 = sfence }
  0x1f   : > { %p261_p1 = scmp.lt.s32.totalorder %s978_s12, 2  ;;  %s1054_s24 = sshll.u32 %s978_s12, 7  ;;  %v989_v5 = vmov 0.0   ;;  %vm513_vm2 = vcmask 1041408  }
  0x20   : > { %s302_s25 = sadd.s32 2, %s1054_s24  ;;  %s1091_s11 = sld [smem:[#allocation2 + %s1054_s24]] }
  0x21   : > { %s1397_s12 = smov (!%p261_p1, %s978_s12), 2  ;;  %s300_s15 = sadd.s32 1, %s1054_s24 }
  0x22   : > { %s847_s26 = sshll.u32 %s1397_s12, 5  ;;  %s848_s27 = smul.u32 24, %s1397_s12 }
  0x23   : > { %s1061_s30 = scalar_lea.vmem %s1387_s1, %s847_s26  ;;  %s815_s4 = sshll.u32 %s1397_s12, 3 }
  0x24   : > { %s1066_s7 = scalar_lea.vmem %s1388_s2, %s848_s27  ;;  %s1071_s10 = scalar_lea.vmem %s1389_s3, %s815_s4  ;;  %v1074_v0 = vld [vmem:[%s1061_s30] sm:$0x3]  ;;  %v1077_v1 = vld [vmem:[%s1061_s30 + $0x10] sm:$0x3]  ;;  %v817_v11 = vld [vmem:[%s1061_s30 + $0x2] sm:$0x3] }
  0x25   : > { %v1080_v2 = vld [vmem:[%s1066_s7] sm:$0x3]  ;;  %v1083_v3 = vld [vmem:[%s1066_s7 + $0xc] sm:$0x3]  ;;  %v314_v4 = vand.u32 2147483647, %v1074_v0 }
  0x26   : > { %671 = vst [vmem:[%s1071_s10 + $0x6] sm:$0x3] %v989_v5  ;;  %vm310_vm0 = vcmp.eq.f32.partialorder %v1080_v2, 0.0  ;;  %vm311_vm1 = vcmp.eq.f32.partialorder %v1083_v3, 0.0  ;;  %v315_v6 = vand.u32 2147483647, %v1077_v1  ;;  %v372_v43 = vstv %s1091_s11 }
  0x27   : > { %v316_v7 = vsub.f32 0.0, %v314_v4  ;;  %v322_v8 = vmax.f32 %v1074_v0, 0.0  ;;  %v841_v9 = vsel %vm310_vm0, 1.0, %v989_v5  ;;  %v842_v10 = vsel %vm311_vm1, 1.0, %v989_v5  ;;  %v818_v15 = vld [vmem:[%s1061_s30 + $0x12] sm:$0x3] }
  0x28   : > { %v317_v12 = vsub.f32 0.0, %v315_v6  ;;  %v604_v13 = vsel %vm513_vm2, %v841_v9, 0.0  ;;  %v605_v14 = vsel %vm513_vm2, %v842_v10, 0.0  ;;  %s1102_s12 = sld [smem:[#allocation2 + %s302_s25]]  ;;  %v323_v17 = vmax.f32 %v1077_v1, 0.0  ;;  %s304_s18 = sadd.s32 3, %s1054_s24 }
  0x29   : > { %v318_v16 = vmul.f32 1.442695, %v316_v7  ;;  %v606_v18 = vadd.f32 %v605_v14, %v604_v13  ;;  %vm308_vm3 = vcmp.eq.f32.partialorder %v1080_v2, 1.0  ;;  %v819_v19 = vld [vmem:[%s1061_s30 + $0x4] sm:$0x3]  ;;  %vm309_vm4 = vcmp.eq.f32.partialorder %v1083_v3, 1.0 }
  0x2a   : > { %v320_v20 = vmul.f32 1.442695, %v317_v12  ;;  %v1109_v21 = vmul.f32 0.5, %v1074_v0  ;;  %v820_v22 = vld [vmem:[%s1061_s30 + $0x14] sm:$0x3]  ;;  %v343_v24 = vmul.f32 0.5, %v817_v11 }
  0x2b   : > { %889 = vpow2.f32 %v318_v16  ;;  %v607_v23 = vsel %vm513_vm2, %v606_v18, 0.0  ;;  %v344_v25 = vmul.f32 0.5, %v818_v15  ;;  %v1115_v26 = vld [vmem:[%s1061_s30 + $0x6] sm:$0x3]  ;;  %v354_v28 = vmul.f32 0.5, %v819_v19  ;;  %s1155_s17 = sld [smem:[#allocation2 + %s300_s15]] }
  0x2c   : > { %891 = vpow2.f32 %v320_v20  ;;  %v608_v27 = vrot.slane %v607_v23, 4  ;;  %v1118_v29 = vld [vmem:[%s1061_s30 + $0x16] sm:$0x3]  ;;  %v1121_v30 = vld [vmem:[%s1061_s30 + $0x8] sm:$0x3]  ;;  %v355_v31 = vmul.f32 0.5, %v820_v22 }
  0x2d   : > { %v1124_v32 = vld [vmem:[%s1061_s30 + $0x18] sm:$0x3]  ;;  %v368_v33 = vmul.f32 1.442695, %v1115_v26  ;;  %v843_v34 = vsel %vm308_vm3, 1.0, %v989_v5  ;;  %893 = vtanh.f32 %v343_v24  ;;  %v844_v46 = vsel %vm309_vm4, 1.0, %v989_v5 }
  0x2e   : > { %v609_v35 = vadd.f32 %v608_v27, %v607_v23  ;;  %v370_v36 = vmul.f32 1.442695, %v1118_v29  ;;  %v375_v37 = vmul.f32 1.442695, %v1121_v30  ;;  %v377_v38 = vmul.f32 1.442695, %v1124_v32 }
  0x2f   : > { %v1133_v39 = vld [vmem:[%s1066_s7 + $0x2] sm:$0x3]  ;;  %v1136_v40 = vld [vmem:[%s1066_s7 + $0xe] sm:$0x3]  ;;  %v1139_v41 = vld [vmem:[%s1066_s7 + $0x4] sm:$0x3]  ;;  %895 = vtanh.f32 %v344_v25  ;;  %v466_v51 = vstv %s1102_s12 }
  0x30   : > { %v610_v42 = vrot.slane %v609_v35, 2  ;;  %v829_v44 = vld [vmem:[%s1066_s7 + $0x6] sm:$0x3]  ;;  %v830_v45 = vld [vmem:[%s1066_s7 + $0x12] sm:$0x3]  ;;  %897 = vtanh.f32 %v354_v28  ;;  %s1189_s19 = sld [smem:[#allocation2 + %s304_s18]] }
  0x31   : > { %v1147_v47 = vld [vmem:[%s1066_s7 + $0x8] sm:$0x3]  ;;  %v1150_v48 = vld [vmem:[%s1066_s7 + $0x14] sm:$0x3]  ;;  %v406_v49 = vmul.f32 0.5, %v829_v44  ;;  %v407_v50 = vmul.f32 0.5, %v830_v45  ;;  %899 = vtanh.f32 %v355_v31  ;;  %v467_v18 = vmul.f32 %v829_v44, %v466_v51 }
  0x32   : > { %v611_v52 = vadd.f32 %v610_v42, %v609_v35  ;;  %v1158_v53 = vld [vmem:[%s1066_s7 + $0x10] sm:$0x3]  ;;  %v412_v54 = vmul.f32 0.5, %v1147_v47  ;;  %v413_v55 = vmul.f32 0.5, %v1150_v48  ;;  %901 = vpow2.f32 %v368_v33 }
  0x33   : > { %v1163_v56 = vsub.f32 %v1133_v39, %v406_v49  ;;  %v1166_v57 = vsub.f32 %v1136_v40, %v407_v50  ;;  %v1169_v58 = vadd.f32 %v1133_v39, %v406_v49  ;;  %903 = vpow2.f32 %v370_v36 }
  0x34   : > { %v612_v59 = vrot.slane %v611_v52, 1  ;;  %v1173_v60 = vadd.f32 %v1136_v40, %v407_v50  ;;  %v1176_v61 = vsub.f32 %v1139_v41, %v412_v54  ;;  %905 = vpow2.f32 %v375_v37 }
  0x35   : > { %v890_v62 = vpop.eup %889  ;;  %v1179_v63 = vsub.f32 %v1158_v53, %v413_v55  ;;  %v1182_v4 = vadd.f32 %v1139_v41, %v412_v54  ;;  %v1185_v5 = vadd.f32 %v1158_v53, %v413_v55  ;;  %907 = vpow2.f32 %v377_v38 }
  0x36   : > { %v892_v6 = vpop.eup %891  ;;  %v324_v7 = vadd.f32 1.0, %v890_v62  ;;  %v613_v9 = vadd.f32 %v612_v59, %v611_v52  ;;  %v444_v10 = vsub.f32 %v1169_v58, %v1163_v56  ;;  %v445_v12 = vsub.f32 %v1173_v60, %v1166_v57 }
  0x37   : > { %v325_v11 = vadd.f32 1.0, %v892_v6  ;;  %v446_v13 = vsub.f32 %v1182_v4, %v1176_v61  ;;  %v447_v14 = vsub.f32 %v1185_v5, %v1179_v63  ;;  %v634_v15 = vsel %vm513_vm2, %v843_v34, 0.0  ;;  %v894_v19 = vpop.eup %893 }
  0x38   : > { %909 = vlog2.f32 %v324_v7  ;;  %614 = vst [vmem:[%s1071_s10 + $0x1] sm:$0x1] %v613_v9  ;;  %v635_v16 = vsel %vm513_vm2, %v844_v46, 0.0  ;;  %v1201_v20 = vmul.f32 0.5, %v1077_v1  ;;  %v347_v25 = vmul.f32 0.5, %v894_v19 }
  0x39   : > { %911 = vlog2.f32 %v325_v11  ;;  %v1203_v22 = vmul.f32 %v446_v13, %v444_v10  ;;  %v1205_v23 = vmul.f32 %v447_v14, %v445_v12  ;;  %v896_v24 = vpop.eup %895  ;;  %v379_v27 = vstv %s1155_s17 }
  0x3a   : > { %v636_v28 = vadd.f32 %v635_v16, %v634_v15  ;;  %v468_v31 = vmul.f32 %v830_v45, %v466_v51  ;;  %v898_v33 = vpop.eup %897  ;;  %913 = vtanh.f32 %v1109_v21  ;;  %v348_v34 = vmul.f32 0.5, %v896_v24 }
  0x3b   : > { %v450_v35 = vand.u32 2147483647, %v1203_v22  ;;  %v451_v36 = vand.u32 2147483647, %v1205_v23  ;;  %v900_v37 = vpop.eup %899  ;;  %v349_v38 = vadd.f32 0.5, %v347_v25  ;;  %v358_v42 = vmul.f32 0.5, %v898_v33 }
  0x3c   : > { %v637_v44 = vsel %vm513_vm2, %v636_v28, 0.0  ;;  %v469_v46 = vadd.f32 1e-16, %v467_v18  ;;  %v902_v49 = vpop.eup %901  ;;  %v1212_v50 = vadd.f32 0.5, %v348_v34  ;;  %v359_v45 = vmul.f32 0.5, %v900_v37 }
  0x3d   : > { %v638_v51 = vrot.slane %v637_v44, 4  ;;  %v470_v21 = vadd.f32 1e-16, %v468_v31  ;;  %v904_v52 = vpop.eup %903  ;;  %v1214_v54 = vadd.f32 0.5, %v358_v42  ;;  %v373_v55 = vmul.f32 %v902_v49, %v372_v43 }
  0x3e   : > { %915 = vlog2.f32 %v469_v46  ;;  %v475_v59 = vstv %s1189_s19  ;;  %v906_v62 = vpop.eup %905  ;;  %v1219_v6 = vadd.f32 0.5, %v359_v45  ;;  %v374_v7 = vmul.f32 %v904_v52, %v372_v43 }
  0x3f   : > { %v639_v9 = vadd.f32 %v638_v51, %v637_v44  ;;  %917 = vlog2.f32 %v470_v21  ;;  %v908_v10 = vpop.eup %907  ;;  %v380_v11 = vmul.f32 %v906_v62, %v379_v27  ;;  %v394_v12 = vmul.f32 0.5, %v373_v55 }
  0x40   : > { %v476_v13 = vmul.f32 %v1147_v47, %v475_v59  ;;  %v477_v14 = vmul.f32 %v1150_v48, %v475_v59  ;;  %v381_v15 = vmul.f32 %v908_v10, %v379_v27  ;;  %v395_v16 = vmul.f32 0.5, %v374_v7 }
  0x41   : > { %v640_v18 = vrot.slane %v639_v9, 2  ;;  %v1226_v19 = vsub.f32 %v349_v38, %v1133_v39  ;;  %v396_v25 = vsub.f32 %v349_v38, %v394_v12  ;;  %v398_v28 = vadd.f32 %v394_v12, %v349_v38 }
  0x42   : > { %v910_v24 = vpop.eup %909  ;;  %v400_v31 = vmul.f32 0.5, %v380_v11  ;;  %v478_v43 = vadd.f32 1e-16, %v476_v13  ;;  %v397_v37 = vsub.f32 %v1212_v50, %v395_v16  ;;  %v399_v42 = vadd.f32 %v395_v16, %v1212_v50 }
  0x43   : > { %v912_v33 = vpop.eup %911  ;;  %v327_v34 = vmul.f32 0.6931472, %v910_v24  ;;  %v401_v47 = vmul.f32 0.5, %v381_v15  ;;  %v418_v39 = vmin.f32 %v398_v28, %v1169_v58  ;;  %v420_v52 = vmax.f32 %v396_v25, %v1163_v56 }
  0x44   : > { %v329_v44 = vmul.f32 0.6931472, %v912_v33  ;;  %v402_v48 = vsub.f32 %v1214_v54, %v400_v31  ;;  %v404_v27 = vadd.f32 %v400_v31, %v1214_v54  ;;  %v1233_v46 = vpop.eup %913  ;;  %v419_v51 = vmin.f32 %v399_v42, %v1173_v60 }
  0x45   : > { %v330_v38 = vadd.f32 %v327_v34, %v322_v8  ;;  %v403_v49 = vsub.f32 %v1219_v6, %v401_v47  ;;  %v405_v45 = vadd.f32 %v401_v47, %v1219_v6  ;;  %v421_v55 = vmax.f32 %v397_v37, %v1166_v57 }
  0x46   : > { %v331_v21 = vadd.f32 %v329_v44, %v323_v17  ;;  %v426_v58 = vmin.f32 %v404_v27, %v1182_v4  ;;  %v428_v8 = vmax.f32 %v402_v48, %v1176_v61  ;;  %v422_v56 = vsub.f32 %v418_v39, %v420_v52 }
  0x47   : > { %v587_v59 = vsel %vm310_vm0, %v330_v38, 0.0  ;;  %v427_v0 = vmin.f32 %v405_v45, %v1185_v5  ;;  %v429_v62 = vmax.f32 %v403_v49, %v1179_v63  ;;  %v423_v60 = vsub.f32 %v419_v51, %v421_v55  ;;  %v1286_v55 = vld [vmem:[%s1061_s30 + $0x1a] sm:$0x3] }
  0x48   : > { %v916_v7 = vpop.eup %915  ;;  %v588_v1 = vsel %vm311_vm1, %v331_v21, 0.0  ;;  %v589_v17 = vsel %vm513_vm2, %v587_v59, 0.0  ;;  %v430_v10 = vsub.f32 %v426_v58, %v428_v8  ;;  %v436_v12 = vsub.f32 %v398_v28, %v396_v25  ;;  %v1290_v58 = vld [vmem:[%s1061_s30 + $0x1c] sm:$0x3] }
  0x49   : > { %v918_v57 = vpop.eup %917  ;;  %v590_v4 = vsel %vm513_vm2, %v588_v1, 0.0  ;;  %v431_v11 = vsub.f32 %v427_v0, %v429_v62  ;;  %v424_v5 = vmax.f32 %v422_v56, 0.0  ;;  %v425_v15 = vmax.f32 %v423_v60, 0.0  ;;  %v1295_v62 = vld [vmem:[%s1061_s30 + $0x1e] sm:$0x3] }
  0x4a   : > { %v591_v13 = vadd.f32 %v590_v4, %v589_v17  ;;  %v437_v61 = vsub.f32 %v399_v42, %v397_v37  ;;  %v432_v16 = vmax.f32 %v430_v10, 0.0  ;;  %v438_v24 = vsub.f32 %v404_v27, %v402_v48 }
  0x4b   : > { %v433_v63 = vmax.f32 %v431_v11, 0.0  ;;  %v439_v31 = vsub.f32 %v405_v45, %v403_v49  ;;  %v641_v34 = vadd.f32 %v640_v18, %v639_v9  ;;  %v472_v47 = vmul.f32 0.6931472, %v916_v7 }
  0x4c   : > { %v592_v33 = vsel %vm513_vm2, %v591_v13, 0.0  ;;  %v474_v44 = vmul.f32 0.6931472, %v918_v57  ;;  %v1255_v38 = vmul.f32 %v432_v16, %v424_v5  ;;  %v440_v21 = vmul.f32 %v438_v24, %v436_v12 }
  0x4d   : > { %v593_v39 = vrot.slane %v592_v33, 4  ;;  %v1257_v51 = vmul.f32 %v433_v63, %v425_v15  ;;  %v441_v25 = vmul.f32 %v439_v31, %v437_v61  ;;  %v642_v28 = vrot.slane %v641_v34, 1 }
  0x4e   : > { %v479_v52 = vadd.f32 1e-16, %v477_v14  ;;  %919 = vlog2.f32 %v478_v43  ;;  %v442_v42 = vand.u32 2147483647, %v440_v21  ;;  %v485_v48 = vsub.f32 %v1212_v50, %v1136_v40  ;;  %v1269_v40 = vld [vmem:[%s1061_s30 + $0xa] sm:$0x3] }
  0x4f   : > { %v594_v37 = vadd.f32 %v593_v39, %v592_v33  ;;  %v486_v9 = vsub.f32 %v1214_v54, %v1139_v41  ;;  %v443_v18 = vand.u32 2147483647, %v441_v25  ;;  %v643_v27 = vadd.f32 %v642_v28, %v641_v34 }
  0x50   : > { %921 = vlog2.f32 %v479_v52  ;;  %v487_v49 = vsub.f32 %v1219_v6, %v1158_v53  ;;  %v452_v43 = vadd.f32 %v450_v35, %v442_v42  ;;  %v488_v45 = vsub.f32 %v1115_v26, %v472_v47  ;;  %v1280_v26 = vld [vmem:[%s1061_s30 + $0xc] sm:$0x3]  ;;  %v1283_v6 = vld [vmem:[%s1061_s30 + $0xe] sm:$0x3] }
  0x51   : > { %v595_v14 = vrot.slane %v594_v37, 2  ;;  %923 = vtanh.f32 %v1201_v20  ;;  %v453_v41 = vadd.f32 %v451_v36, %v443_v18  ;;  %644 = vst [vmem:[%s1071_s10 + $0x3] sm:$0x1] %v643_v27  ;;  %v492_v50 = vmul.f32 %v1226_v19, %v1226_v19 }
  0x52   : > { %v494_v54 = vmul.f32 %v486_v9, %v486_v9  ;;  %v454_v22 = vsub.f32 %v452_v43, %v1255_v38  ;;  %v489_v35 = vsub.f32 %v1118_v29, %v474_v44  ;;  %v493_v23 = vmul.f32 %v485_v48, %v485_v48 }
  0x53   : > { %v596_v53 = vadd.f32 %v595_v14, %v594_v37  ;;  %v455_v20 = vsub.f32 %v453_v41, %v1257_v51  ;;  %v495_v36 = vmul.f32 %v487_v49, %v487_v49  ;;  %v514_v19 = vsel %vm513_vm2, %v1269_v40, -inf }
  0x54   : > { %v456_v0 = vadd.f32 1e-06, %v454_v22  ;;  %v496_v8 = vadd.f32 %v494_v54, %v492_v50  ;;  %v498_v29 = vmul.f32 %v488_v45, %v488_v45  ;;  %v515_v1 = vsel %vm513_vm2, %v1280_v26, -inf }
  0x55   : > { %v597_v59 = vrot.slane %v596_v53, 1  ;;  %v457_v7 = vadd.f32 1e-06, %v455_v20  ;;  %v516_v17 = vsel %vm513_vm2, %v1283_v6, -inf  ;;  %v519_v56 = vsel %vm513_vm2, %v1286_v55, -inf }
  0x56   : > { %925 = vrcp.f32 %v456_v0  ;;  %v499_v57 = vmul.f32 %v489_v35, %v489_v35  ;;  %v517_v4 = vmax.f32 %v514_v19, %v516_v17  ;;  %v497_v11 = vadd.f32 %v495_v36, %v493_v23  ;;  %v839_v19 = vld [vmem:[%s1066_s7 + $0xa] sm:$0x3] }
  0x57   : > { %v598_v60 = vadd.f32 %v597_v59, %v596_v53  ;;  %927 = vrcp.f32 %v457_v7  ;;  %v520_v12 = vsel %vm513_vm2, %v1290_v58, -inf  ;;  %v521_v13 = vsel %vm513_vm2, %v1295_v62, -inf  ;;  %v840_v7 = vld [vmem:[%s1066_s7 + $0x16] sm:$0x3] }
  0x58   : > { %v920_v10 = vpop.eup %919  ;;  %v1308_v15 = vmax.f32 %v517_v4, %v515_v1  ;;  %v522_v61 = vmax.f32 %v519_v56, %v521_v13  ;;  %v500_v63 = vadd.f32 %v498_v29, %v496_v8  ;;  %v336_v44 = vmul.f32 0.5, %v1233_v46 }
  0x59   : > { %599 = vst [vmem:[%s1071_s10] sm:$0x1] %v598_v60  ;;  %v481_v5 = vmul.f32 0.6931472, %v920_v10  ;;  %v501_v39 = vadd.f32 %v499_v57, %v497_v11  ;;  %v849_v1 = vtrunc.f32 %v839_v19  ;;  %v851_v4 = vtrunc.f32 %v840_v7 }
  0x5a   : > { %v922_v16 = vpop.eup %921  ;;  %v1311_v33 = vmax.f32 %v522_v61, %v520_v12  ;;  %v524_v34 = vsub.f32 %v1269_v40, %v1308_v15  ;;  %v525_v21 = vsub.f32 %v1280_v26, %v1308_v15  ;;  %v526_v25 = vsub.f32 %v1283_v6, %v1308_v15 }
  0x5b   : > { %v483_v24 = vmul.f32 0.6931472, %v922_v16  ;;  %v490_v31 = vsub.f32 %v1121_v30, %v481_v5  ;;  %v924_v47 = vpop.eup %923  ;;  %v338_v53 = vadd.f32 0.5, %v336_v44  ;;  %v850_v13 = vcvt.f32.s32 %v849_v1 }
  0x5c   : > { %v527_v30 = vsub.f32 %v1286_v55, %v1311_v33  ;;  %v528_v37 = vsub.f32 %v1290_v58, %v1311_v33  ;;  %v529_v42 = vsub.f32 %v1295_v62, %v1311_v33  ;;  %v530_v46 = vmul.f32 1.442695, %v524_v34 }
  0x5d   : > { %v491_v28 = vsub.f32 %v1124_v32, %v483_v24  ;;  %v502_v52 = vmul.f32 %v490_v31, %v490_v31  ;;  %v532_v48 = vmul.f32 1.442695, %v525_v21  ;;  %v534_v9 = vmul.f32 1.442695, %v526_v25 }
  0x5e   : > { %v337_v18 = vmul.f32 0.5, %v924_v47  ;;  %v536_v14 = vmul.f32 1.442695, %v527_v30  ;;  %929 = vpow2.f32 %v530_v46  ;;  %v538_v32 = vmul.f32 1.442695, %v528_v37 }
  0x5f   : > { %v503_v27 = vmul.f32 %v491_v28, %v491_v28  ;;  %v504_v49 = vadd.f32 %v502_v52, %v500_v63  ;;  %931 = vpow2.f32 %v532_v48  ;;  %v540_v50 = vmul.f32 1.442695, %v529_v42 }
  0x60   : > { %v926_v43 = vpop.eup %925  ;;  %933 = vpow2.f32 %v534_v9  ;;  %v339_v20 = vadd.f32 0.5, %v337_v18  ;;  %v852_v28 = vcvt.f32.s32 %v851_v4  ;;  %vm563_vm5 = vcmp.eq.s32.totalorder %v850_v13, 0 }
  0x61   : > { %v505_v45 = vadd.f32 %v503_v27, %v501_v39  ;;  %v645_v41 = vsel %vm308_vm3, %v504_v49, 0.0  ;;  %v928_v54 = vpop.eup %927  ;;  %v460_v22 = vmul.f32 %v926_v43, %v1255_v38  ;;  %935 = vpow2.f32 %v536_v14 }
  0x62   : > { %v647_v35 = vsel %vm513_vm2, %v645_v41, 0.0  ;;  %v461_v23 = vmul.f32 %v928_v54, %v1257_v51  ;;  %937 = vpow2.f32 %v538_v32  ;;  %vm564_vm6 = vcmp.eq.s32.totalorder %v850_v13, 1 }
  0x63   : > { %v646_v36 = vsel %vm309_vm4, %v505_v45, 0.0  ;;  %v462_v59 = vmul.f32 %v460_v22, %v1080_v2  ;;  %939 = vpow2.f32 %v540_v50  ;;  %vm566_vm7 = vcmp.eq.s32.totalorder %v852_v28, 0 }
  0x64   : > { %v648_v0 = vsel %vm513_vm2, %v646_v36, 0.0  ;;  %v463_v8 = vmul.f32 %v461_v23, %v1083_v3  ;;  %vm567_vm8 = vcmp.eq.s32.totalorder %v852_v28, 1  ;;  %v569_v32 = vsel %vm563_vm5, %v1269_v40, 0.0 }
  0x65   : > { %v649_v29 = vadd.f32 %v648_v0, %v647_v35  ;;  %v464_v38 = vsub.f32 %v338_v53, %v462_v59  ;;  %v570_v50 = vsel %vm564_vm6, %v1280_v26, 0.0  ;;  %vm565_vm9 = vcmp.eq.s32.totalorder %v850_v13, 2 }
  0x66   : > { %v465_v17 = vsub.f32 %v339_v20, %v463_v8  ;;  %v572_v53 = vsel %vm566_vm7, %v1286_v55, 0.0  ;;  %v573_v22 = vsel %vm567_vm8, %v1290_v58, 0.0  ;;  %v575_v35 = vsel %vm513_vm2, %v569_v32, 0.0 }
  0x67   : > { %v650_v51 = vsel %vm513_vm2, %v649_v29, 0.0  ;;  %v615_v56 = vmul.f32 %v464_v38, %v464_v38  ;;  %v576_v20 = vsel %vm513_vm2, %v570_v50, 0.0  ;;  %vm568_vm10 = vcmp.eq.s32.totalorder %v852_v28, 2 }
  0x68   : > { %v651_v60 = vrot.slane %v650_v51, 4  ;;  %v616_v57 = vmul.f32 %v465_v17, %v465_v17  ;;  %v930_v10 = vpop.eup %929  ;;  %v571_v40 = vsel %vm565_vm9, %v1283_v6, 0.0  ;;  %v577_v19 = vadd.f32 %v576_v20, %v575_v35 }
  0x69   : > { %v617_v11 = vsel %vm308_vm3, %v615_v56, 0.0  ;;  %v932_v5 = vpop.eup %931  ;;  %v542_v63 = vsel %vm513_vm2, %v930_v10, 0.0  ;;  %v580_v26 = vsel %vm513_vm2, %v572_v53, 0.0  ;;  %v581_v59 = vsel %vm513_vm2, %v573_v22, 0.0 }
  0x6a   : > { %v652_v12 = vadd.f32 %v651_v60, %v650_v51  ;;  %v618_v61 = vsel %vm309_vm4, %v616_v57, 0.0  ;;  %v619_v16 = vsel %vm513_vm2, %v617_v11, 0.0  ;;  %v934_v24 = vpop.eup %933  ;;  %v543_v47 = vsel %vm513_vm2, %v932_v5, 0.0 }
  0x6b   : > { %v620_v31 = vsel %vm513_vm2, %v618_v61, 0.0  ;;  %v936_v44 = vpop.eup %935  ;;  %v544_v21 = vadd.f32 %v543_v47, %v542_v63  ;;  %v545_v25 = vsel %vm513_vm2, %v934_v24, 0.0  ;;  %v574_v0 = vsel %vm568_vm10, %v1295_v62, 0.0 }
  0x6c   : > { %v653_v34 = vrot.slane %v652_v12, 2  ;;  %v621_v39 = vadd.f32 %v620_v31, %v619_v16  ;;  %v938_v52 = vpop.eup %937  ;;  %v547_v37 = vsel %vm513_vm2, %v936_v44, 0.0  ;;  %v578_v55 = vsel %vm513_vm2, %v571_v40, 0.0 }
  0x6d   : > { %v940_v42 = vpop.eup %939  ;;  %v546_v48 = vadd.f32 %v545_v25, %v544_v21  ;;  %v548_v9 = vsel %vm513_vm2, %v938_v52, 0.0  ;;  %v582_v29 = vadd.f32 %v581_v59, %v580_v26  ;;  %v579_v7 = vadd.f32 %v578_v55, %v577_v19 }
  0x6e   : > { %v654_v30 = vadd.f32 %v653_v34, %v652_v12  ;;  %v622_v46 = vsel %vm513_vm2, %v621_v39, 0.0  ;;  %v549_v49 = vadd.f32 %v548_v9, %v547_v37  ;;  %v550_v14 = vsel %vm513_vm2, %v940_v42, 0.0 }
  0x6f   : > { %v623_v18 = vrot.slane %v622_v46, 4  ;;  %941 = vlog2.f32 %v546_v48  ;;  %v583_v1 = vsel %vm513_vm2, %v574_v0, 0.0 }
  0x70   : > { %v655_v27 = vrot.slane %v654_v30, 1  ;;  %v551_v41 = vadd.f32 %v550_v14, %v549_v49  ;;  %v584_v56 = vadd.f32 %v583_v1, %v582_v29 }
  0x71   : > { %v624_v43 = vadd.f32 %v623_v18, %v622_v46 }
  0x72   : > { %v656_v45 = vadd.f32 %v655_v27, %v654_v30  ;;  %943 = vlog2.f32 %v551_v41 }
  0x73   : > { %v625_v54 = vrot.slane %v624_v43, 2 }
  0x74   : > { %657 = vst [vmem:[%s1071_s10 + $0x4] sm:$0x1] %v656_v45 }
  0x75   : > { %v626_v23 = vadd.f32 %v625_v54, %v624_v43 }
  0x77   : > { %v627_v36 = vrot.slane %v626_v23, 1 }
  0x79   : > { %v628_v8 = vadd.f32 %v627_v36, %v626_v23  ;;  %v942_v58 = vpop.eup %941 }
  0x7a   : > { %v553_v38 = vmul.f32 0.6931472, %v942_v58 }
  0x7b   : > { %629 = vst [vmem:[%s1071_s10 + $0x2] sm:$0x1] %v628_v8 }
  0x7c   : > { %v944_v17 = vpop.eup %943  ;;  %v556_v6 = vadd.f32 %v553_v38, %v1308_v15 }
  0x7d   : > { %v555_v51 = vmul.f32 0.6931472, %v944_v17 }
  0x7e   : > { %v585_v60 = vsub.f32 %v556_v6, %v579_v7 }
  0x7f   : > { %v557_v57 = vadd.f32 %v555_v51, %v1311_v33 }
  0x80   : > { %v658_v62 = vsel %vm308_vm3, %v585_v60, 0.0 }
  0x81   : > { %v586_v4 = vsub.f32 %v557_v57, %v584_v56  ;;  %v660_v10 = vsel %vm513_vm2, %v658_v62, 0.0 }
  0x83   : > { %v659_v11 = vsel %vm309_vm4, %v586_v4, 0.0 }
  0x84   : > { %v661_v12 = vsel %vm513_vm2, %v659_v11, 0.0 }
  0x85   : > { %v662_v13 = vadd.f32 %v661_v12, %v660_v10 }
  0x87   : > { %v663_v15 = vsel %vm513_vm2, %v662_v13, 0.0 }
  0x88   : > { %v664_v5 = vrot.slane %v663_v15, 4 }
  0x8a   : > { %v665_v61 = vadd.f32 %v664_v5, %v663_v15 }
  0x8c   : > { %v666_v16 = vrot.slane %v665_v61, 2 }
  0x8e   : > { %v667_v63 = vadd.f32 %v666_v16, %v665_v61 }
  0x90   : > { %v668_v24 = vrot.slane %v667_v63, 1 }
  0x92   : > { %v669_v33 = vadd.f32 %v668_v24, %v667_v63 }
  0x94   : > { %670 = vst [vmem:[%s1071_s10 + $0x5] sm:$0x1] %v669_v33 }
  0x95 PF: > { %s14_s14 = sadd.s32 1, %s986_s14   ;;  %s1392_s12 = smov %s982_s13 }
  0x96   : > { %p11_p2 = scmp.ge.s32.totalorder %s14_s14, 5   ;;  %s1393_s13 = smov %s1395_s16 }
  0x98   :  { %13 = sbr.rel (!%p11_p2) target bundleno = 2 (0x2), region = 80 }
  0x9f   :  { %703 = vsyncpa [#allocation3], 1 }
  0xa0   :  { %705 = vsyncpa [#allocation3 + $0x1], 1 }

</bundles_post_ra>
